<compile_context>
chip_gen: v5e
topology: v5e:2x2
jax: 0.10.0
libtpu: 0.0.40
codegen_flags: <defaults>
</compile_context>

<pallas_src>
import functools

import jax
import jax.numpy as jnp
import numpy as np
from jax import lax
from jax.experimental import pallas as pl
from jax.experimental.pallas import tpu as pltpu


def _round_up(x, m):
    return (x + m - 1) // m * m


def _make_linear_effects_kernel(Bt, Lp, Cp, W, L_true, C_true,
                                num_iterations, enforce_stability, use_bf16):
    pad = W // 2
    pad_left = _round_up(pad, 8)        # sublane-aligned interior offset
    base = pad_left - pad               # row where tap k=0 starts reading
    needs_row_mask = (Lp != L_true)
    inv_true_size = 1.0 / float(L_true * C_true)
    mm_dtype = jnp.bfloat16 if use_bf16 else jnp.float32

    def _mean_keepdims(x):
        # Two-step reduction (lanes then sublanes) -> (Bt, 1, 1)
        s = jnp.sum(x, axis=2, keepdims=True)
        s = jnp.sum(s, axis=1, keepdims=True)
        return s * inv_true_size

    def kernel(m0_ref, mu_ref, out_ref, mpad_ref):
        # m0_ref  : (Bt, Lp, Cp)                  zero-padded input motifs
        # mu_ref  : (W*Cp, Cp)                    im2col weight: mu2[k*Cp+ci, co]
        # out_ref : (Bt, Lp, Cp)
        # mpad_ref: (Bt, pad_left + Lp + pad, Cp) f32 working buffer

        # Zero only the halo rows (cheap; done every grid step, megacore-safe).
        if pad_left > 0:
            mpad_ref[:, pl.ds(0, pad_left), :] = jnp.zeros(
                (Bt, pad_left, Cp), jnp.float32)
        if pad > 0:
            mpad_ref[:, pl.ds(pad_left + Lp, pad), :] = jnp.zeros(
                (Bt, pad, Cp), jnp.float32)

        # m0 is loop-invariant: load + cast ONCE and reuse every iteration.
        m0_init = m0_ref[...].astype(jnp.float32)
        mpad_ref[:, pl.ds(pad_left, Lp), :] = m0_init

        # Loop-invariant row mask (JAX does not CSE broadcast_in_dim, so hoist).
        if needs_row_mask:
            row_ok = lax.broadcasted_iota(jnp.int32, (Bt, Lp, Cp), 1) < L_true

        if enforce_stability:
            # Vectorized per-batch-element target means; padded rows/channels
            # are zero so a padded-tile sum is exact.  Shape (Bt, 1, 1).
            target_means = _mean_keepdims(m0_init)

        def one_iteration(write_output):
            # W tap-wise accumulating matmuls (no materialized im2col slab).
            acc = None
            for k in range(W):
                x_k = mpad_ref[:, pl.ds(base + k, Lp), :].reshape(Bt * Lp, Cp)
                w_k = mu_ref[pl.ds(k * Cp, Cp), :]
                p = jnp.dot(x_k.astype(mm_dtype), w_k.astype(mm_dtype),
                            preferred_element_type=jnp.float32)
                acc = p if acc is None else acc + p
            conv = acc.reshape(Bt, Lp, Cp)
            m = jnp.maximum(conv + m0_init, 0.0)
            if needs_row_mask:
                # Rows that only exist due to sequence padding must stay zero
                # so they never contaminate later iterations or the means.
                m = jnp.where(row_ok, m, 0.0)
            if enforce_stability:
                means = _mean_keepdims(m)
                m = m * (target_means / (1e-5 + means))
            if write_output:
                out_ref[...] = m.astype(out_ref.dtype)
            else:
                mpad_ref[:, pl.ds(pad_left, Lp), :] = m

        n_body = num_iterations - 1
        if n_body <= 4:
            for _ in range(n_body):          # short: unroll (scheduler visibility)
                one_iteration(False)
        else:
            @pl.loop(0, n_body)              # long: real loop, bounded live ranges
            def _(_it):
                one_iteration(False)
        one_iteration(True)                  # final iteration writes straight to out

    return kernel


@functools.partial(
    jax.jit,
    static_argnames=("num_iterations", "enforce_stability", "use_bf16_matmul"))
def linear_effects_forward(m0, mu, *, num_iterations, enforce_stability=False,
                           use_bf16_matmul=False):
    """
    m0 : (B, L, C) -- input motifs (batch, sequence, num_motifs)
    mu : (C, C, W) -- conv weight (c_out, c_in, width), W odd
    returns m of shape (B, L, C)
    """
    # TODO(synk): the `collect_intermediates` dict of the PyTorch module is
    # host-side bookkeeping and is not reproduced; only final motifs return.
    B, L, C = m0.shape
    c_out, c_in, W = mu.shape
    assert c_out == C and c_in == C and W % 2 == 1
    if num_iterations == 0:
        return m0

    pad = W // 2
    pad_left = _round_up(pad, 8)
    Cp = _round_up(C, 128)      # lane-dense channels
    Lp = _round_up(L, 8)        # sublane-aligned sequence length

    # TODO(synk): for C << 128 the channel zero-padding wastes MXU FLOPs / HBM
    # bandwidth; this kernel targets C >= 128 workloads (a lane-repacked layout
    # folding sequence positions into lanes would be needed to fix small C).
    m0_p = m0
    if (Cp, Lp) != (C, L):
        m0_p = jnp.pad(m0, ((0, 0), (0, Lp - L), (0, Cp - C)))
    # TODO(synk): the host-side pad + final slice each cost an HBM pass; an
    # in-kernel zero-fill from an unpadded pl.ANY ref would remove them.

    # im2col weight: mu2[k*Cp + c_in, c_out] = mu[c_out, c_in, k]
    mu_dtype = jnp.bfloat16 if use_bf16_matmul else jnp.float32
    mu_p = jnp.zeros((Cp, Cp, W), jnp.float32).at[:C, :C, :].set(
        mu.astype(jnp.float32))
    mu2 = jnp.transpose(mu_p, (2, 1, 0)).reshape(W * Cp, Cp).astype(mu_dtype)

    itemsize = jnp.dtype(m0.dtype).itemsize
    mu_itemsize = jnp.dtype(mu_dtype).itemsize

    def footprint(bt):
        mpad = bt * (pad_left + Lp + pad) * Cp * 4
        io = 2 * bt * Lp * Cp * itemsize * 2          # double-buffered in + out
        mu_b = 2 * W * Cp * Cp * mu_itemsize          # double-buffered mu2
        temps = 4 * bt * Lp * Cp * 4                  # acc / m / m0_init headroom
        return mpad + io + mu_b + temps

    # Fold batch into the MXU M dim: target ~1024 matmul rows, keep the tile
    # footprint under a conservative cross-generation VMEM budget (v7x has only
    # 64 MiB), and prefer >= 2 grid steps so both v7x TensorCores get work.
    budget = 48 * 1024 * 1024
    target_rows = 1024
    divisors = [d for d in range(1, B + 1) if B % d == 0]
    feasible = [d for d in divisors
                if d * Lp <= max(target_rows, Lp) and footprint(d) <= budget]
    if not feasible:
        feasible = [1]
    multi = [d for d in feasible if B // d >= 2]
    Bt = max(multi) if multi else max(feasible)

    kernel = _make_linear_effects_kernel(
        Bt, Lp, Cp, W, L, C, num_iterations, enforce_stability, use_bf16_matmul)

    vmem_limit = int(min(max(int(footprint(Bt) * 1.5), 32 * 1024 * 1024),
                         64 * 1024 * 1024))
    flops = 2.0 * num_iterations * B * Lp * W * Cp * Cp
    bytes_accessed = 2 * B * Lp * Cp * itemsize + W * Cp * Cp * mu_itemsize
    cost = pl.CostEstimate(flops=int(flops), transcendentals=0,
                           bytes_accessed=int(bytes_accessed))

    out_p = pl.pallas_call(
        kernel,
        out_shape=jax.ShapeDtypeStruct((B, Lp, Cp), m0.dtype),
        grid_spec=pltpu.PrefetchScalarGridSpec(
            num_scalar_prefetch=0,
            grid=(B // Bt,),
            in_specs=[
                pl.BlockSpec((Bt, Lp, Cp), lambda b: (b, 0, 0)),
                # NOTE: mu2's index_map is constant so the same block is reused
                # every step; pipeline_mode=pl.Buffered(1) would save one copy
                # but is left at the default for robustness.
                pl.BlockSpec((W * Cp, Cp), lambda b: (0, 0)),
            ],
            out_specs=pl.BlockSpec((Bt, Lp, Cp), lambda b: (b, 0, 0)),
            scratch_shapes=[
                pltpu.VMEM((Bt, pad_left + Lp + pad, Cp), jnp.float32)],
        ),
        compiler_params=pltpu.CompilerParams(
            dimension_semantics=("parallel",),
            vmem_limit_bytes=vmem_limit),
        cost_estimate=cost,
    )(m0_p, mu2)

    return out_p[:, :L, :C]


def linear_effects_reference(m0, mu, *, num_iterations, enforce_stability=False):
    """Pure-JAX reference mirroring the PyTorch forward exactly."""
    x = jnp.transpose(m0, (0, 2, 1))  # (B, C, L), like m0.transpose(1, 2) in torch
    target_mean = jnp.mean(x, axis=(1, 2))
    pad = mu.shape[-1] // 2
    m = x
    for _ in range(num_iterations):
        conv = jax.lax.conv_general_dilated(
            m, mu, window_strides=(1,), padding=[(pad, pad)],
            dimension_numbers=("NCH", "OIH", "NCH"),
        )
        m = jax.nn.relu(conv + x)
        if enforce_stability:
            factor = target_mean / (1e-5 + jnp.mean(m, axis=(1, 2)))
            m = m * factor[:, None, None]
    return jnp.transpose(m, (0, 2, 1))


if __name__ == "__main__":
    # Small, deterministic configuration consistent with the module:
    #   num_motifs = 8, cl = 4 -> width = 5 (odd), num_iterations = 3
    B, L, C = 2, 16, 8
    cl = 4
    W = cl + 1
    num_iterations = 3

    key = jax.random.PRNGKey(0)
    k_m0, k_mu = jax.random.split(key)
    m0 = jnp.abs(jax.random.normal(k_m0, (B, L, C), dtype=jnp.float32))
    # deterministic synthetic "mu" parameter, scaled small for stability
    mu = 0.05 * jax.random.normal(k_mu, (C, C, W), dtype=jnp.float32)

    ok = True
    for enforce_stability in (False, True):
        out = linear_effects_forward(
            m0, mu, num_iterations=num_iterations,
            enforce_stability=enforce_stability,
        )
        out = jax.block_until_ready(out)
        ref = linear_effects_reference(
            m0, mu, num_iterations=num_iterations,
            enforce_stability=enforce_stability,
        )
        ok = ok and bool(np.allclose(np.asarray(out), np.asarray(ref),
                                     atol=1e-4, rtol=1e-4))

    if ok:
        print("KERNEL_OK")
    else:
        print("KERNEL_MISMATCH")
</pallas_src>

<mosaic_0001>
module attributes {stable_mosaic.version = 11 : i64} {
  func.func @kernel(%arg0: i32, %arg1: memref<1x16x128xf32, #tpu.memory_space<vmem>>, %arg2: memref<640x128xf32, #tpu.memory_space<vmem>>, %arg3: memref<1x16x128xf32, #tpu.memory_space<vmem>>, %arg4: memref<1x26x128xf32, #tpu.memory_space<vmem>>) attributes {dimension_semantics = [#tpu.dimension_semantics<parallel>], iteration_bounds = array<i64: 2>, scalar_prefetch = 0 : i64, scratch_operands = 1 : i64, tpu.core_type = #tpu.core_type<tc>, window_params = [{transform_indices = @transform_0, window_bounds = array<i64: 1, 16, 128>}, {pipeline_mode = #tpu.pipeline_mode<synchronous>, transform_indices = @transform_1, window_bounds = array<i64: 640, 128>}, {transform_indices = @transform_2, window_bounds = array<i64: 1, 16, 128>}]} {
    %cst = arith.constant 0.000000e+00 : f32
    %0 = vector.broadcast %cst : f32 to vector<1x8x128xf32>
    %c0 = arith.constant 0 : index
    %c0_0 = arith.constant 0 : index
    %c0_1 = arith.constant 0 : index
    %1 = vector.load %arg4[%c0, %c0_0, %c0_1] : memref<1x26x128xf32, #tpu.memory_space<vmem>>, vector<1x8x128xf32>
    tpu.vector_store %arg4[%c0, %c0_0, %c0_1], %0 {strides = array<i32>} : memref<1x26x128xf32, #tpu.memory_space<vmem>>, vector<1x8x128xf32>,
    %cst_2 = arith.constant 0.000000e+00 : f32
    %2 = vector.broadcast %cst_2 : f32 to vector<1x2x128xf32>
    %c0_3 = arith.constant 0 : index
    %c24 = arith.constant 24 : index
    %c0_4 = arith.constant 0 : index
    %3 = vector.load %arg4[%c0_3, %c24, %c0_4] : memref<1x26x128xf32, #tpu.memory_space<vmem>>, vector<1x2x128xf32>
    tpu.vector_store %arg4[%c0_3, %c24, %c0_4], %2 {strides = array<i32>} : memref<1x26x128xf32, #tpu.memory_space<vmem>>, vector<1x2x128xf32>,
    %c0_5 = arith.constant 0 : index
    %c0_6 = arith.constant 0 : index
    %c0_7 = arith.constant 0 : index
    %4 = vector.load %arg1[%c0_5, %c0_6, %c0_7] : memref<1x16x128xf32, #tpu.memory_space<vmem>>, vector<1x16x128xf32>
    %c0_8 = arith.constant 0 : index
    %c8 = arith.constant 8 : index
    %c0_9 = arith.constant 0 : index
    %5 = vector.load %arg4[%c0_8, %c8, %c0_9] : memref<1x26x128xf32, #tpu.memory_space<vmem>>, vector<1x16x128xf32>
    tpu.vector_store %arg4[%c0_8, %c8, %c0_9], %4 {strides = array<i32>} : memref<1x26x128xf32, #tpu.memory_space<vmem>>, vector<1x16x128xf32>,
    %c0_10 = arith.constant 0 : index
    %c6 = arith.constant 6 : index
    %c0_11 = arith.constant 0 : index
    %6 = vector.load %arg4[%c0_10, %c6, %c0_11] : memref<1x26x128xf32, #tpu.memory_space<vmem>>, vector<1x16x128xf32>
    %7 = vector.shape_cast %6 : vector<1x16x128xf32> to vector<16x128xf32>
    %c0_12 = arith.constant 0 : index
    %c0_13 = arith.constant 0 : index
    %8 = vector.load %arg2[%c0_12, %c0_13] : memref<640x128xf32, #tpu.memory_space<vmem>>, vector<128x128xf32>
    %cst_14 = arith.constant dense<0.000000e+00> : vector<16x128xf32>
    %9 = tpu.matmul %7, %8, %cst_14 {dimension_numbers = #tpu.dot_dimension_numbers<[1], [0], [0], [1], [0, 0, 1, 1], [], []>} : vector<16x128xf32>, vector<128x128xf32>, vector<16x128xf32> -> vector<16x128xf32>
    %c0_15 = arith.constant 0 : index
    %c7 = arith.constant 7 : index
    %c0_16 = arith.constant 0 : index
    %10 = vector.load %arg4[%c0_15, %c7, %c0_16] : memref<1x26x128xf32, #tpu.memory_space<vmem>>, vector<1x16x128xf32>
    %11 = vector.shape_cast %10 : vector<1x16x128xf32> to vector<16x128xf32>
    %c128 = arith.constant 128 : index
    %c0_17 = arith.constant 0 : index
    %12 = vector.load %arg2[%c128, %c0_17] : memref<640x128xf32, #tpu.memory_space<vmem>>, vector<128x128xf32>
    %cst_18 = arith.constant dense<0.000000e+00> : vector<16x128xf32>
    %13 = tpu.matmul %11, %12, %cst_18 {dimension_numbers = #tpu.dot_dimension_numbers<[1], [0], [0], [1], [0, 0, 1, 1], [], []>} : vector<16x128xf32>, vector<128x128xf32>, vector<16x128xf32> -> vector<16x128xf32>
    %14 = arith.addf %9, %13 : vector<16x128xf32>
    %c0_19 = arith.constant 0 : index
    %c8_20 = arith.constant 8 : index
    %c0_21 = arith.constant 0 : index
    %15 = vector.load %arg4[%c0_19, %c8_20, %c0_21] : memref<1x26x128xf32, #tpu.memory_space<vmem>>, vector<1x16x128xf32>
    %16 = vector.shape_cast %15 : vector<1x16x128xf32> to vector<16x128xf32>
    %c256 = arith.constant 256 : index
    %c0_22 = arith.constant 0 : index
    %17 = vector.load %arg2[%c256, %c0_22] : memref<640x128xf32, #tpu.memory_space<vmem>>, vector<128x128xf32>
    %cst_23 = arith.constant dense<0.000000e+00> : vector<16x128xf32>
    %18 = tpu.matmul %16, %17, %cst_23 {dimension_numbers = #tpu.dot_dimension_numbers<[1], [0], [0], [1], [0, 0, 1, 1], [], []>} : vector<16x128xf32>, vector<128x128xf32>, vector<16x128xf32> -> vector<16x128xf32>
    %19 = arith.addf %14, %18 : vector<16x128xf32>
    %c0_24 = arith.constant 0 : index
    %c9 = arith.constant 9 : index
    %c0_25 = arith.constant 0 : index
    %20 = vector.load %arg4[%c0_24, %c9, %c0_25] : memref<1x26x128xf32, #tpu.memory_space<vmem>>, vector<1x16x128xf32>
    %21 = vector.shape_cast %20 : vector<1x16x128xf32> to vector<16x128xf32>
    %c384 = arith.constant 384 : index
    %c0_26 = arith.constant 0 : index
    %22 = vector.load %arg2[%c384, %c0_26] : memref<640x128xf32, #tpu.memory_space<vmem>>, vector<128x128xf32>
    %cst_27 = arith.constant dense<0.000000e+00> : vector<16x128xf32>
    %23 = tpu.matmul %21, %22, %cst_27 {dimension_numbers = #tpu.dot_dimension_numbers<[1], [0], [0], [1], [0, 0, 1, 1], [], []>} : vector<16x128xf32>, vector<128x128xf32>, vector<16x128xf32> -> vector<16x128xf32>
    %24 = arith.addf %19, %23 : vector<16x128xf32>
    %c0_28 = arith.constant 0 : index
    %c10 = arith.constant 10 : index
    %c0_29 = arith.constant 0 : index
    %25 = vector.load %arg4[%c0_28, %c10, %c0_29] : memref<1x26x128xf32, #tpu.memory_space<vmem>>, vector<1x16x128xf32>
    %26 = vector.shape_cast %25 : vector<1x16x128xf32> to vector<16x128xf32>
    %c512 = arith.constant 512 : index
    %c0_30 = arith.constant 0 : index
    %27 = vector.load %arg2[%c512, %c0_30] : memref<640x128xf32, #tpu.memory_space<vmem>>, vector<128x128xf32>
    %cst_31 = arith.constant dense<0.000000e+00> : vector<16x128xf32>
    %28 = tpu.matmul %26, %27, %cst_31 {dimension_numbers = #tpu.dot_dimension_numbers<[1], [0], [0], [1], [0, 0, 1, 1], [], []>} : vector<16x128xf32>, vector<128x128xf32>, vector<16x128xf32> -> vector<16x128xf32>
    %29 = arith.addf %24, %28 : vector<16x128xf32>
    %30 = vector.shape_cast %29 : vector<16x128xf32> to vector<1x16x128xf32>
    %31 = arith.addf %30, %4 : vector<1x16x128xf32>
    %cst_32 = arith.constant 0.000000e+00 : f32
    %32 = vector.broadcast %cst_32 : f32 to vector<1x16x128xf32>
    %33 = arith.maximumf %31, %32 : vector<1x16x128xf32>
    %c0_33 = arith.constant 0 : index
    %c8_34 = arith.constant 8 : index
    %c0_35 = arith.constant 0 : index
    %34 = vector.load %arg4[%c0_33, %c8_34, %c0_35] : memref<1x26x128xf32, #tpu.memory_space<vmem>>, vector<1x16x128xf32>
    tpu.vector_store %arg4[%c0_33, %c8_34, %c0_35], %33 {strides = array<i32>} : memref<1x26x128xf32, #tpu.memory_space<vmem>>, vector<1x16x128xf32>,
    %c0_36 = arith.constant 0 : index
    %c6_37 = arith.constant 6 : index
    %c0_38 = arith.constant 0 : index
    %35 = vector.load %arg4[%c0_36, %c6_37, %c0_38] : memref<1x26x128xf32, #tpu.memory_space<vmem>>, vector<1x16x128xf32>
    %36 = vector.shape_cast %35 : vector<1x16x128xf32> to vector<16x128xf32>
    %c0_39 = arith.constant 0 : index
    %c0_40 = arith.constant 0 : index
    %37 = vector.load %arg2[%c0_39, %c0_40] : memref<640x128xf32, #tpu.memory_space<vmem>>, vector<128x128xf32>
    %cst_41 = arith.constant dense<0.000000e+00> : vector<16x128xf32>
    %38 = tpu.matmul %36, %37, %cst_41 {dimension_numbers = #tpu.dot_dimension_numbers<[1], [0], [0], [1], [0, 0, 1, 1], [], []>} : vector<16x128xf32>, vector<128x128xf32>, vector<16x128xf32> -> vector<16x128xf32>
    %c0_42 = arith.constant 0 : index
    %c7_43 = arith.constant 7 : index
    %c0_44 = arith.constant 0 : index
    %39 = vector.load %arg4[%c0_42, %c7_43, %c0_44] : memref<1x26x128xf32, #tpu.memory_space<vmem>>, vector<1x16x128xf32>
    %40 = vector.shape_cast %39 : vector<1x16x128xf32> to vector<16x128xf32>
    %c128_45 = arith.constant 128 : index
    %c0_46 = arith.constant 0 : index
    %41 = vector.load %arg2[%c128_45, %c0_46] : memref<640x128xf32, #tpu.memory_space<vmem>>, vector<128x128xf32>
    %cst_47 = arith.constant dense<0.000000e+00> : vector<16x128xf32>
    %42 = tpu.matmul %40, %41, %cst_47 {dimension_numbers = #tpu.dot_dimension_numbers<[1], [0], [0], [1], [0, 0, 1, 1], [], []>} : vector<16x128xf32>, vector<128x128xf32>, vector<16x128xf32> -> vector<16x128xf32>
    %43 = arith.addf %38, %42 : vector<16x128xf32>
    %c0_48 = arith.constant 0 : index
    %c8_49 = arith.constant 8 : index
    %c0_50 = arith.constant 0 : index
    %44 = vector.load %arg4[%c0_48, %c8_49, %c0_50] : memref<1x26x128xf32, #tpu.memory_space<vmem>>, vector<1x16x128xf32>
    %45 = vector.shape_cast %44 : vector<1x16x128xf32> to vector<16x128xf32>
    %c256_51 = arith.constant 256 : index
    %c0_52 = arith.constant 0 : index
    %46 = vector.load %arg2[%c256_51, %c0_52] : memref<640x128xf32, #tpu.memory_space<vmem>>, vector<128x128xf32>
    %cst_53 = arith.constant dense<0.000000e+00> : vector<16x128xf32>
    %47 = tpu.matmul %45, %46, %cst_53 {dimension_numbers = #tpu.dot_dimension_numbers<[1], [0], [0], [1], [0, 0, 1, 1], [], []>} : vector<16x128xf32>, vector<128x128xf32>, vector<16x128xf32> -> vector<16x128xf32>
    %48 = arith.addf %43, %47 : vector<16x128xf32>
    %c0_54 = arith.constant 0 : index
    %c9_55 = arith.constant 9 : index
    %c0_56 = arith.constant 0 : index
    %49 = vector.load %arg4[%c0_54, %c9_55, %c0_56] : memref<1x26x128xf32, #tpu.memory_space<vmem>>, vector<1x16x128xf32>
    %50 = vector.shape_cast %49 : vector<1x16x128xf32> to vector<16x128xf32>
    %c384_57 = arith.constant 384 : index
    %c0_58 = arith.constant 0 : index
    %51 = vector.load %arg2[%c384_57, %c0_58] : memref<640x128xf32, #tpu.memory_space<vmem>>, vector<128x128xf32>
    %cst_59 = arith.constant dense<0.000000e+00> : vector<16x128xf32>
    %52 = tpu.matmul %50, %51, %cst_59 {dimension_numbers = #tpu.dot_dimension_numbers<[1], [0], [0], [1], [0, 0, 1, 1], [], []>} : vector<16x128xf32>, vector<128x128xf32>, vector<16x128xf32> -> vector<16x128xf32>
    %53 = arith.addf %48, %52 : vector<16x128xf32>
    %c0_60 = arith.constant 0 : index
    %c10_61 = arith.constant 10 : index
    %c0_62 = arith.constant 0 : index
    %54 = vector.load %arg4[%c0_60, %c10_61, %c0_62] : memref<1x26x128xf32, #tpu.memory_space<vmem>>, vector<1x16x128xf32>
    %55 = vector.shape_cast %54 : vector<1x16x128xf32> to vector<16x128xf32>
    %c512_63 = arith.constant 512 : index
    %c0_64 = arith.constant 0 : index
    %56 = vector.load %arg2[%c512_63, %c0_64] : memref<640x128xf32, #tpu.memory_space<vmem>>, vector<128x128xf32>
    %cst_65 = arith.constant dense<0.000000e+00> : vector<16x128xf32>
    %57 = tpu.matmul %55, %56, %cst_65 {dimension_numbers = #tpu.dot_dimension_numbers<[1], [0], [0], [1], [0, 0, 1, 1], [], []>} : vector<16x128xf32>, vector<128x128xf32>, vector<16x128xf32> -> vector<16x128xf32>
    %58 = arith.addf %53, %57 : vector<16x128xf32>
    %59 = vector.shape_cast %58 : vector<16x128xf32> to vector<1x16x128xf32>
    %60 = arith.addf %59, %4 : vector<1x16x128xf32>
    %cst_66 = arith.constant 0.000000e+00 : f32
    %61 = vector.broadcast %cst_66 : f32 to vector<1x16x128xf32>
    %62 = arith.maximumf %60, %61 : vector<1x16x128xf32>
    %c0_67 = arith.constant 0 : index
    %c8_68 = arith.constant 8 : index
    %c0_69 = arith.constant 0 : index
    %63 = vector.load %arg4[%c0_67, %c8_68, %c0_69] : memref<1x26x128xf32, #tpu.memory_space<vmem>>, vector<1x16x128xf32>
    tpu.vector_store %arg4[%c0_67, %c8_68, %c0_69], %62 {strides = array<i32>} : memref<1x26x128xf32, #tpu.memory_space<vmem>>, vector<1x16x128xf32>,
    %c0_70 = arith.constant 0 : index
    %c6_71 = arith.constant 6 : index
    %c0_72 = arith.constant 0 : index
    %64 = vector.load %arg4[%c0_70, %c6_71, %c0_72] : memref<1x26x128xf32, #tpu.memory_space<vmem>>, vector<1x16x128xf32>
    %65 = vector.shape_cast %64 : vector<1x16x128xf32> to vector<16x128xf32>
    %c0_73 = arith.constant 0 : index
    %c0_74 = arith.constant 0 : index
    %66 = vector.load %arg2[%c0_73, %c0_74] : memref<640x128xf32, #tpu.memory_space<vmem>>, vector<128x128xf32>
    %cst_75 = arith.constant dense<0.000000e+00> : vector<16x128xf32>
    %67 = tpu.matmul %65, %66, %cst_75 {dimension_numbers = #tpu.dot_dimension_numbers<[1], [0], [0], [1], [0, 0, 1, 1], [], []>} : vector<16x128xf32>, vector<128x128xf32>, vector<16x128xf32> -> vector<16x128xf32>
    %c0_76 = arith.constant 0 : index
    %c7_77 = arith.constant 7 : index
    %c0_78 = arith.constant 0 : index
    %68 = vector.load %arg4[%c0_76, %c7_77, %c0_78] : memref<1x26x128xf32, #tpu.memory_space<vmem>>, vector<1x16x128xf32>
    %69 = vector.shape_cast %68 : vector<1x16x128xf32> to vector<16x128xf32>
    %c128_79 = arith.constant 128 : index
    %c0_80 = arith.constant 0 : index
    %70 = vector.load %arg2[%c128_79, %c0_80] : memref<640x128xf32, #tpu.memory_space<vmem>>, vector<128x128xf32>
    %cst_81 = arith.constant dense<0.000000e+00> : vector<16x128xf32>
    %71 = tpu.matmul %69, %70, %cst_81 {dimension_numbers = #tpu.dot_dimension_numbers<[1], [0], [0], [1], [0, 0, 1, 1], [], []>} : vector<16x128xf32>, vector<128x128xf32>, vector<16x128xf32> -> vector<16x128xf32>
    %72 = arith.addf %67, %71 : vector<16x128xf32>
    %c0_82 = arith.constant 0 : index
    %c8_83 = arith.constant 8 : index
    %c0_84 = arith.constant 0 : index
    %73 = vector.load %arg4[%c0_82, %c8_83, %c0_84] : memref<1x26x128xf32, #tpu.memory_space<vmem>>, vector<1x16x128xf32>
    %74 = vector.shape_cast %73 : vector<1x16x128xf32> to vector<16x128xf32>
    %c256_85 = arith.constant 256 : index
    %c0_86 = arith.constant 0 : index
    %75 = vector.load %arg2[%c256_85, %c0_86] : memref<640x128xf32, #tpu.memory_space<vmem>>, vector<128x128xf32>
    %cst_87 = arith.constant dense<0.000000e+00> : vector<16x128xf32>
    %76 = tpu.matmul %74, %75, %cst_87 {dimension_numbers = #tpu.dot_dimension_numbers<[1], [0], [0], [1], [0, 0, 1, 1], [], []>} : vector<16x128xf32>, vector<128x128xf32>, vector<16x128xf32> -> vector<16x128xf32>
    %77 = arith.addf %72, %76 : vector<16x128xf32>
    %c0_88 = arith.constant 0 : index
    %c9_89 = arith.constant 9 : index
    %c0_90 = arith.constant 0 : index
    %78 = vector.load %arg4[%c0_88, %c9_89, %c0_90] : memref<1x26x128xf32, #tpu.memory_space<vmem>>, vector<1x16x128xf32>
    %79 = vector.shape_cast %78 : vector<1x16x128xf32> to vector<16x128xf32>
    %c384_91 = arith.constant 384 : index
    %c0_92 = arith.constant 0 : index
    %80 = vector.load %arg2[%c384_91, %c0_92] : memref<640x128xf32, #tpu.memory_space<vmem>>, vector<128x128xf32>
    %cst_93 = arith.constant dense<0.000000e+00> : vector<16x128xf32>
    %81 = tpu.matmul %79, %80, %cst_93 {dimension_numbers = #tpu.dot_dimension_numbers<[1], [0], [0], [1], [0, 0, 1, 1], [], []>} : vector<16x128xf32>, vector<128x128xf32>, vector<16x128xf32> -> vector<16x128xf32>
    %82 = arith.addf %77, %81 : vector<16x128xf32>
    %c0_94 = arith.constant 0 : index
    %c10_95 = arith.constant 10 : index
    %c0_96 = arith.constant 0 : index
    %83 = vector.load %arg4[%c0_94, %c10_95, %c0_96] : memref<1x26x128xf32, #tpu.memory_space<vmem>>, vector<1x16x128xf32>
    %84 = vector.shape_cast %83 : vector<1x16x128xf32> to vector<16x128xf32>
    %c512_97 = arith.constant 512 : index
    %c0_98 = arith.constant 0 : index
    %85 = vector.load %arg2[%c512_97, %c0_98] : memref<640x128xf32, #tpu.memory_space<vmem>>, vector<128x128xf32>
    %cst_99 = arith.constant dense<0.000000e+00> : vector<16x128xf32>
    %86 = tpu.matmul %84, %85, %cst_99 {dimension_numbers = #tpu.dot_dimension_numbers<[1], [0], [0], [1], [0, 0, 1, 1], [], []>} : vector<16x128xf32>, vector<128x128xf32>, vector<16x128xf32> -> vector<16x128xf32>
    %87 = arith.addf %82, %86 : vector<16x128xf32>
    %88 = vector.shape_cast %87 : vector<16x128xf32> to vector<1x16x128xf32>
    %89 = arith.addf %88, %4 : vector<1x16x128xf32>
    %cst_100 = arith.constant 0.000000e+00 : f32
    %90 = vector.broadcast %cst_100 : f32 to vector<1x16x128xf32>
    %91 = arith.maximumf %89, %90 : vector<1x16x128xf32>
    %c0_101 = arith.constant 0 : index
    %c0_102 = arith.constant 0 : index
    %c0_103 = arith.constant 0 : index
    %92 = vector.load %arg3[%c0_101, %c0_102, %c0_103] : memref<1x16x128xf32, #tpu.memory_space<vmem>>, vector<1x16x128xf32>
    tpu.vector_store %arg3[%c0_101, %c0_102, %c0_103], %91 {strides = array<i32>} : memref<1x16x128xf32, #tpu.memory_space<vmem>>, vector<1x16x128xf32>,
    return
  }
  func.func @transform_0(%arg0: i32) -> (i32, i32, i32) {
    %c0_i32 = arith.constant 0 : i32
    %c0_i32_0 = arith.constant 0 : i32
    %c0_i32_1 = arith.constant 0 : i32
    return %arg0, %c0_i32, %c0_i32_0 : i32, i32, i32
  }
  func.func @transform_1(%arg0: i32) -> (i32, i32) {
    %c0_i32 = arith.constant 0 : i32
    %c0_i32_0 = arith.constant 0 : i32
    %c0_i32_1 = arith.constant 0 : i32
    return %c0_i32, %c0_i32_0 : i32, i32
  }
  func.func @transform_2(%arg0: i32) -> (i32, i32, i32) {
    %c0_i32 = arith.constant 0 : i32
    %c0_i32_0 = arith.constant 0 : i32
    %c0_i32_1 = arith.constant 0 : i32
    return %arg0, %c0_i32, %c0_i32_0 : i32, i32, i32
  }
}

</mosaic_0001>

<bundles_post_ra>
// kernel: linear_effects_forward.1
= control target key start
LH: loop header
LB: loop body
LE: loop exit
PB: predicated region body
PF: predicated region fallthrough
CT: control target
= control target key end

     0   :  { %s918_s9 = smov 0   ;;  %s1622_s0 = inlined_call_operand.vmem [shape: f32[2,16,128], index: 0, kind: input, shape index: {}]   ;;  %s1623_s1 = inlined_call_operand.vmem [shape: f32[640,128], index: 1, kind: input, shape index: {}]   ;;  %s1624_s2 = inlined_call_operand.vmem [shape: f32[2,16,128], index: 2, kind: output, shape index: {}]  }
   0x1 LB: > { %s856_s10 = sadd.s32 4294967295, %s900_s9   ;;  %p860_p0 = scmp.ge.s32.totalorder %s900_s9, 1  ;;  %s900_s9 = sphi %s918_s9, %s12_s9  }
   0x2   : > { %p112_p1 = scmp.lt.s32.totalorder %s900_s9, 3 }
   0x4   : > { %p113_p2 = pnand %p860_p0, %p112_p1 }
   0x6   : > { %116 = sbr.rel (%p113_p2) target bundleno = 534 (0x216), region = 28 }
   0xb   : > { %v929_v0 = vld [vmem:[%s1623_s1 + $0xf8] sm:$0xff]  ;;  %v934_v1 = vld [vmem:[%s1623_s1 + $0xf0] sm:$0xff]  ;;  %v940_v2 = vld [vmem:[%s1623_s1 + $0xe8] sm:$0xff]  ;;  %v902_v17 = vmov 0.0   ;;  %p1036_p3 = scmp.lt.s32.totalorder %s856_s10, 1 }
   0xc   : > { %186 = vmatpush.msra.mxu0 %v929_v0  ;;  %v945_v3 = vld [vmem:[%s1623_s1 + $0x178] sm:$0xff]  ;;  %v950_v4 = vld [vmem:[%s1623_s1 + $0x170] sm:$0xff]  ;;  %v967_v7 = vld [vmem:[%s1623_s1 + $0xe0] sm:$0xff]  ;;  %144 = vst [vmem:[#allocation2] sm:$0xff] %v902_v17 }
   0xd   : > { %1669 = vst [vmem:[#allocation3_spill] sm:$0xff] %v945_v3  ;;  %250 = vmatpush.msra.mxu2 %v945_v3  ;;  %v957_v5 = vld [vmem:[%s1623_s1 + $0x1f8] sm:$0xff]  ;;  %v974_v8 = vld [vmem:[%s1623_s1 + $0x168] sm:$0xff]  ;;  %v979_v9 = vld [vmem:[%s1623_s1 + $0x1f0] sm:$0xff]  ;;  %s1719_s10 = smov (!%p1036_p3, %s856_s10), 1 }
   0xe   : > { %1670 = vst [vmem:[#allocation4_spill] sm:$0xff] %v950_v4  ;;  %187 = vmatpush.msra.mxu0 %v934_v1  ;;  %v962_v6 = vld [vmem:[%s1623_s1 + $0x78] sm:$0xff]  ;;  %293 = vmatpush.msra.mxu3 %v957_v5  ;;  %v986_v10 = vld [vmem:[%s1623_s1 + $0x70] sm:$0xff]  ;;  %v991_v11 = vld [vmem:[%s1623_s1 + $0x1e8] sm:$0xff]  ;;  %s867_s30 = sshll.u32 %s1719_s10, 4 }
   0xf   : > { %209 = vmatpush.msra.mxu1 %v962_v6  ;;  %251 = vmatpush.msra.mxu2 %v950_v4  ;;  %v996_v12 = vld [vmem:[%s1623_s1 + $0xd8] sm:$0xff]  ;;  %v1003_v13 = vld [vmem:[%s1623_s1 + $0x160] sm:$0xff]  ;;  %v1008_v14 = vld [vmem:[%s1623_s1 + $0x68] sm:$0xff]  ;;  %145 = vst [vmem:[#allocation2 + $0x18] sm:$0x3] %v902_v17  ;;  %s138_s19 = scalar_lea.vmem %s1622_s0, %s867_s30  ;;  %s143_s25 = scalar_lea.vmem %s1624_s2, %s867_s30 }
  0x10   : > { %188 = vmatpush.msra.mxu0 %v940_v2  ;;  %294 = vmatpush.msra.mxu3 %v979_v9  ;;  %1671 = vst [vmem:[#allocation5_spill] sm:$0xff] %v1003_v13  ;;  %v1015_v15 = vld [vmem:[%s1623_s1 + $0x1e0] sm:$0xff]  ;;  %v1025_v18 = vld [vmem:[%s1623_s1 + $0xd0] sm:$0xff]  ;;  %v1032_v19 = vld [vmem:[%s1623_s1 + $0x158] sm:$0xff] }
  0x11   : > { %210 = vmatpush.msra.mxu1 %v986_v10  ;;  %252 = vmatpush.msra.mxu2 %v974_v8  ;;  %1672 = vst [vmem:[#allocation6_spill] sm:$0xff] %v1015_v15  ;;  %v1020_v16 = vld [vmem:[%s1623_s1 + $0x60] sm:$0xff]  ;;  %v1045_v20 = vld [vmem:[%s1623_s1 + $0x1d8] sm:$0xff]  ;;  %v1055_v22 = vld [vmem:[%s1623_s1 + $0xc8] sm:$0xff] }
  0x12   : > { %189 = vmatpush.msra.mxu0 %v967_v7  ;;  %295 = vmatpush.msra.mxu3 %v991_v11  ;;  %1673 = vst [vmem:[#allocation7_spill] sm:$0xff] %v1032_v19  ;;  %v1050_v21 = vld [vmem:[%s1623_s1 + $0x58] sm:$0xff]  ;;  %v1062_v23 = vld [vmem:[%s1623_s1 + $0x150] sm:$0xff]  ;;  %v1079_v26 = vld [vmem:[%s1623_s1 + $0xc0] sm:$0xff] }
  0x13   : > { %211 = vmatpush.msra.mxu1 %v1008_v14  ;;  %253 = vmatpush.msra.mxu2 %v1003_v13  ;;  %1675 = vst [vmem:[#allocation8_spill] sm:$0xff] %v1062_v23  ;;  %v1069_v24 = vld [vmem:[%s1623_s1 + $0x1d0] sm:$0xff]  ;;  %v1086_v27 = vld [vmem:[%s1623_s1 + $0x148] sm:$0xff]  ;;  %v1109_v30 = vld [vmem:[%s1623_s1 + $0xb8] sm:$0xff] }
  0x14   : > { %190 = vmatpush.msra.mxu0 %v996_v12  ;;  %296 = vmatpush.msra.mxu3 %v1015_v15  ;;  %1676 = vst [vmem:[#allocation9_spill] sm:$0xff] %v1069_v24  ;;  %v1074_v25 = vld [vmem:[%s1623_s1 + $0x50] sm:$0xff]  ;;  %v1099_v28 = vld [vmem:[%s1623_s1 + $0x1c8] sm:$0xff]  ;;  %v1116_v31 = vld [vmem:[%s1623_s1 + $0x140] sm:$0xff] }
  0x15   : > { %212 = vmatpush.msra.mxu1 %v1020_v16  ;;  %254 = vmatpush.msra.mxu2 %v1032_v19  ;;  %1677 = vst [vmem:[#allocation10_spill] sm:$0xff] %v1086_v27  ;;  %v1104_v29 = vld [vmem:[%s1623_s1 + $0x48] sm:$0xff]  ;;  %v1123_v32 = vld [vmem:[%s1623_s1 + $0x1c0] sm:$0xff]  ;;  %v1133_v34 = vld [vmem:[%s1623_s1 + $0xb0] sm:$0xff] }
  0x16   : > { %191 = vmatpush.msra.mxu0 %v1025_v18  ;;  %297 = vmatpush.msra.mxu3 %v1045_v20  ;;  %1678 = vst [vmem:[#allocation11_spill] sm:$0xff] %v1099_v28  ;;  %v1128_v33 = vld [vmem:[%s1623_s1 + $0x40] sm:$0xff]  ;;  %v1140_v35 = vld [vmem:[%s1623_s1 + $0x138] sm:$0xff]  ;;  %v1158_v38 = vld [vmem:[%s1623_s1 + $0xa8] sm:$0xff] }
  0x17   : > { %213 = vmatpush.msra.mxu1 %v1050_v21  ;;  %255 = vmatpush.msra.mxu2 %v1062_v23  ;;  %1679 = vst [vmem:[#allocation12_spill] sm:$0xff] %v1123_v32  ;;  %v1148_v36 = vld [vmem:[%s1623_s1 + $0x1b8] sm:$0xff]  ;;  %v1165_v39 = vld [vmem:[%s1623_s1 + $0x130] sm:$0xff]  ;;  %v1187_v42 = vld [vmem:[%s1623_s1 + $0xa0] sm:$0xff] }
  0x18   : > { %192 = vmatpush.msra.mxu0 %v1055_v22  ;;  %298 = vmatpush.msra.mxu3 %v1069_v24  ;;  %1680 = vst [vmem:[#allocation13_spill] sm:$0xff] %v1148_v36  ;;  %v1153_v37 = vld [vmem:[%s1623_s1 + $0x38] sm:$0xff]  ;;  %v1172_v40 = vld [vmem:[%s1623_s1 + $0x1b0] sm:$0xff]  ;;  %v1194_v43 = vld [vmem:[%s1623_s1 + $0x128] sm:$0xff] }
  0x19   : > { %214 = vmatpush.msra.mxu1 %v1074_v25  ;;  %256 = vmatpush.msra.mxu2 %v1086_v27  ;;  %1681 = vst [vmem:[#allocation14_spill] sm:$0xff] %v1165_v39  ;;  %v1177_v41 = vld [vmem:[%s1623_s1 + $0x30] sm:$0xff]  ;;  %v1200_v44 = vld [vmem:[%s1623_s1 + $0x98] sm:$0xff]  ;;  %v1206_v45 = vld [vmem:[%s1623_s1 + $0x1a8] sm:$0xff] }
  0x1a   : > { %193 = vmatpush.msra.mxu0 %v1079_v26  ;;  %299 = vmatpush.msra.mxu3 %v1099_v28  ;;  %1682 = vst [vmem:[#allocation15_spill] sm:$0xff] %v1172_v40  ;;  %v1211_v46 = vld [vmem:[%s1623_s1 + $0x28] sm:$0xff]  ;;  %v1218_v47 = vld [vmem:[%s1623_s1 + $0x120] sm:$0xff]  ;;  %v1240_v52 = vld [vmem:[%s1623_s1 + $0x90] sm:$0xff] }
  0x1b   : > { %215 = vmatpush.msra.mxu1 %v1104_v29  ;;  %257 = vmatpush.msra.mxu2 %v1116_v31  ;;  %1683 = vst [vmem:[#allocation16_spill] sm:$0xff] %v1206_v45  ;;  %v1220_v48 = vld [vmem:[%s138_s19] sm:$0xff]  ;;  %v1222_v49 = vld [vmem:[%s138_s19 + $0x8] sm:$0xff]  ;;  %v1247_v53 = vld [vmem:[%s1623_s1 + $0x118] sm:$0xff] }
  0x1c   : > { %194 = vmatpush.msra.mxu0 %v1109_v30  ;;  %300 = vmatpush.msra.mxu3 %v1123_v32  ;;  %1684 = vst [vmem:[#allocation17_spill] sm:$0xff] %v1220_v48  ;;  %v1229_v50 = vld [vmem:[%s1623_s1 + $0x1a0] sm:$0xff]  ;;  %v1255_v54 = vld [vmem:[%s1623_s1 + $0x198] sm:$0xff]  ;;  %v1265_v56 = vld [vmem:[%s1623_s1 + $0x88] sm:$0xff] }
  0x1d   : > { %216 = vmatpush.msra.mxu1 %v1128_v33  ;;  %258 = vmatpush.msra.mxu2 %v1140_v35  ;;  %1685 = vst [vmem:[#allocation18_spill] sm:$0xff] %v1222_v49  ;;  %v1234_v51 = vld [vmem:[%s1623_s1 + $0x20] sm:$0xff]  ;;  %v1260_v55 = vld [vmem:[%s1623_s1 + $0x18] sm:$0xff]  ;;  %v1272_v57 = vld [vmem:[%s1623_s1 + $0x110] sm:$0xff] }
  0x1e   : > { %195 = vmatpush.msra.mxu0 %v1133_v34  ;;  %301 = vmatpush.msra.mxu3 %v1148_v36  ;;  %1686 = vst [vmem:[#allocation19_spill] sm:$0xff] %v1229_v50  ;;  %v1279_v58 = vld [vmem:[%s1623_s1 + $0x190] sm:$0xff]  ;;  %v1289_v60 = vld [vmem:[%s1623_s1 + $0x80] sm:$0xff]  ;;  %v1296_v61 = vld [vmem:[%s1623_s1 + $0x108] sm:$0xff] }
  0x1f   : > { %217 = vmatpush.msra.mxu1 %v1153_v37  ;;  %259 = vmatpush.msra.mxu2 %v1165_v39  ;;  %148 = vst [vmem:[#allocation2 + $0x8] sm:$0xff] %v1220_v48  ;;  %v1284_v59 = vld [vmem:[%s1623_s1 + $0x10] sm:$0xff]  ;;  %v1302_v62 = vld [vmem:[%s1623_s1 + $0x278] sm:$0xff]  ;;  %v1308_v63 = vld [vmem:[%s1623_s1 + $0x188] sm:$0xff] }
  0x20   : > { %196 = vmatpush.msra.mxu0 %v1158_v38  ;;  %302 = vmatpush.msra.mxu3 %v1172_v40  ;;  %149 = vst [vmem:[#allocation2 + $0x10] sm:$0xff] %v1222_v49  ;;  %v1315_v17 = vld [vmem:[%s1623_s1 + $0x100] sm:$0xff]  ;;  %v1344_v40 = vld [vmem:[%s1623_s1 + $0x268] sm:$0xff] }
  0x21   : > { %218 = vmatpush.msra.mxu1 %v1177_v41  ;;  %260 = vmatpush.msra.mxu2 %v1194_v43  ;;  %1687 = vst [vmem:[#allocation20_spill] sm:$0xff] %v1255_v54  ;;  %v1353_v28 = vld [vmem:[%s1623_s1 + $0x260] sm:$0xff] }
  0x22   : > { %197 = vmatpush.msra.mxu0 %v1187_v42  ;;  %303 = vmatpush.msra.mxu3 %v1206_v45  ;;  %1688 = vst [vmem:[#allocation21_spill] sm:$0xff] %v1279_v58  ;;  %v1339_v45 = vld [vmem:[%s1623_s1] sm:$0xff] }
  0x23   : > { %219 = vmatpush.msra.mxu1 %v1211_v46  ;;  %261 = vmatpush.msra.mxu2 %v1218_v47  ;;  %1689 = vst [vmem:[#allocation22_spill] sm:$0xff] %v1308_v63 }
  0x24   : > { %198 = vmatpush.msra.mxu0 %v1200_v44  ;;  %304 = vmatpush.msra.mxu3 %v1229_v50  ;;  %1690 = vst [vmem:[#allocation23_spill] sm:$0xff] %v1315_v17  ;;  %v1326_v50 = vld [vmem:[%s1623_s1 + $0x270] sm:$0xff] }
  0x25   : > { %220 = vmatpush.msra.mxu1 %v1234_v51  ;;  %262 = vmatpush.msra.mxu2 %v1247_v53 }
  0x26   : > { %199 = vmatpush.msra.mxu0 %v1240_v52  ;;  %305 = vmatpush.msra.mxu3 %v1255_v54  ;;  %v1320_v54 = vld [vmem:[%s1623_s1 + $0x8] sm:$0xff] }
  0x27   : > { %221 = vmatpush.msra.mxu1 %v1260_v55  ;;  %263 = vmatpush.msra.mxu2 %v1272_v57  ;;  %v168_v36 = vld [vmem:[#allocation2 + $0x7] sm:$0xff] }
  0x28   : > { %200 = vmatpush.msra.mxu0 %v1265_v56  ;;  %306 = vmatpush.msra.mxu3 %v1279_v58  ;;  %v1334_v58 = vld [vmem:[%s1623_s1 + $0x180] sm:$0xff] }
  0x29   : > { %222 = vmatpush.msra.mxu1 %v1284_v59  ;;  %264 = vmatpush.msra.mxu2 %v1296_v61  ;;  %1691 = vst [vmem:[#allocation24_spill] sm:$0xff] %v1334_v58  ;;  %v150_v32 = vld [vmem:[#allocation2 + $0x6] sm:$0xff] }
  0x2a   : > { %201 = vmatpush.msra.mxu0 %v1289_v60  ;;  %307 = vmatpush.msra.mxu3 %v1308_v63  ;;  %v275_v63 = vld [vmem:[#allocation2 + $0x9] sm:$0xff] }
  0x2b   : > { %265 = vmatpush.msra.mxu2 %v1315_v17  ;;  %223 = vmatpush.msra.mxu1 %v1320_v54  ;;  %v1361_v17 = vld [vmem:[%s1623_s1 + $0x258] sm:$0xff] }
  0x2c   : > { %336 = vmatpush.msrb.mxu0 %v1302_v62  ;;  %266 = vmatmul.f32.vlgmr.msra.gmra.mxu2 %v1220_v48  ;;  %v1368_v48 = vld [vmem:[%s1623_s1 + $0x250] sm:$0xff] }
  0x2d   : > { %308 = vmatpush.msra.mxu3 %v1334_v58  ;;  %224 = vmatpush.msra.mxu1 %v1339_v45  ;;  %v1386_v58 = vld [vmem:[%s1623_s1 + $0x240] sm:$0xff] }
  0x2e   : > { %337 = vmatpush.msrb.mxu0 %v1326_v50  ;;  %309 = vmatmul.f32.vlgmr.msra.gmra.mxu3 %v275_v63  ;;  %v169_v63 = vld [vmem:[#allocation2 + $0xf] sm:$0xff] }
  0x2f   : > { %202 = vmatmul.f32.vlgmr.msra.gmra.mxu0 %v168_v36  ;;  %225 = vmatmul.f32.vlgmr.msra.gmra.mxu1 %v150_v32  ;;  %v1377_v32 = vld [vmem:[%s1623_s1 + $0x248] sm:$0xff]  ;;  %v276_v36 = vld [vmem:[#allocation2 + $0x11] sm:$0xff] }
  0x30   : > { %338 = vmatpush.msrb.mxu0 %v1344_v40  ;;  %403 = vmatpush.msrb.mxu1 %v929_v0 }
  0x31   : > { %426 = vmatpush.msrb.mxu2 %v962_v6  ;;  %467 = vmatpush.msrb.mxu3 %v945_v3  ;;  %v151_v3 = vld [vmem:[#allocation2 + $0xe] sm:$0xff] }
  0x32   : > { %339 = vmatpush.msrb.mxu0 %v1353_v28  ;;  %404 = vmatpush.msrb.mxu1 %v934_v1 }
  0x33   : > { %427 = vmatpush.msrb.mxu2 %v986_v10  ;;  %468 = vmatpush.msrb.mxu3 %v950_v4  ;;  %v1394_v4 = vld [vmem:[%s1623_s1 + $0x238] sm:$0xff] }
  0x34   : > { %340 = vmatpush.msrb.mxu0 %v1361_v17  ;;  %269 = vmatmul.f32.gmra.mxu2 %v1222_v49  ;;  %v1401_v49 = vld [vmem:[%s1623_s1 + $0x230] sm:$0xff] }
  0x35   : > { %405 = vmatpush.msrb.mxu1 %v940_v2  ;;  %428 = vmatpush.msrb.mxu2 %v1008_v14 }
  0x36   : > { %341 = vmatpush.msrb.mxu0 %v1368_v48  ;;  %312 = vmatmul.f32.gmra.mxu3 %v276_v36  ;;  %v1419_v36 = vld [vmem:[%s1623_s1 + $0x220] sm:$0xff] }
  0x37   : > { %205 = vmatmul.f32.gmra.mxu0 %v169_v63  ;;  %228 = vmatmul.f32.gmra.mxu1 %v151_v3  ;;  %v1410_v3 = vld [vmem:[%s1623_s1 + $0x228] sm:$0xff]  ;;  %v1428_v63 = vld [vmem:[%s1623_s1 + $0x218] sm:$0xff] }
  0x38   : > { %342 = vmatpush.msrb.mxu0 %v1377_v32  ;;  %406 = vmatpush.msrb.mxu1 %v967_v7 }
  0x39   : > { %469 = vmatpush.msrb.mxu3 %v974_v8  ;;  %429 = vmatpush.msrb.mxu2 %v1020_v16 }
  0x3a   : > { %343 = vmatpush.msrb.mxu0 %v1386_v58  ;;  %407 = vmatpush.msrb.mxu1 %v996_v12 }
  0x3b   : > { %470 = vmatpush.msrb.mxu3 %v1003_v13  ;;  %430 = vmatpush.msrb.mxu2 %v1050_v21  ;;  %v318_v13 = vld [vmem:[#allocation2 + $0xa] sm:$0xff] }
  0x3c   : > { %344 = vmatpush.msrb.mxu0 %v1394_v4  ;;  %408 = vmatpush.msrb.mxu1 %v1025_v18 }
  0x3d   : > { %471 = vmatpush.msrb.mxu3 %v1032_v19  ;;  %431 = vmatpush.msrb.mxu2 %v1074_v25  ;;  %v1437_v19 = vld [vmem:[%s1623_s1 + $0x210] sm:$0xff] }
  0x3e   : > { %345 = vmatpush.msrb.mxu0 %v1401_v49  ;;  %409 = vmatpush.msrb.mxu1 %v1055_v22 }
  0x3f   : > { %472 = vmatpush.msrb.mxu3 %v1062_v23  ;;  %432 = vmatpush.msrb.mxu2 %v1104_v29  ;;  %v1446_v23 = vld [vmem:[%s1623_s1 + $0x208] sm:$0xff] }
  0x40   : > { %346 = vmatpush.msrb.mxu0 %v1410_v3  ;;  %410 = vmatpush.msrb.mxu1 %v1079_v26  ;;  %1692 = vst [vmem:[#allocation25_spill] sm:$0xff] %v1446_v23 }
  0x41   : > { %473 = vmatpush.msrb.mxu3 %v1086_v27  ;;  %433 = vmatpush.msrb.mxu2 %v1128_v33  ;;  %v1455_v27 = vld [vmem:[%s1623_s1 + $0x200] sm:$0xff] }
  0x42   : > { %347 = vmatpush.msrb.mxu0 %v1419_v36  ;;  %411 = vmatpush.msrb.mxu1 %v1109_v30  ;;  %1693 = vst [vmem:[#allocation26_spill] sm:$0xff] %v1455_v27 }
  0x43   : > { %474 = vmatpush.msrb.mxu3 %v1116_v31  ;;  %434 = vmatpush.msrb.mxu2 %v1153_v37 }
  0x44   : > { %348 = vmatpush.msrb.mxu0 %v1428_v63  ;;  %412 = vmatpush.msrb.mxu1 %v1133_v34 }
  0x45   : > { %475 = vmatpush.msrb.mxu3 %v1140_v35  ;;  %435 = vmatpush.msrb.mxu2 %v1177_v41 }
  0x46   : > { %349 = vmatpush.msrb.mxu0 %v1437_v19  ;;  %413 = vmatpush.msrb.mxu1 %v1158_v38 }
  0x47   : > { %476 = vmatpush.msrb.mxu3 %v1165_v39  ;;  %436 = vmatpush.msrb.mxu2 %v1211_v46  ;;  %v319_v39 = vld [vmem:[#allocation2 + $0x12] sm:$0xff] }
  0x48   : > { %350 = vmatpush.msrb.mxu0 %v1446_v23  ;;  %414 = vmatpush.msrb.mxu1 %v1187_v42 }
  0x49   : > { %477 = vmatpush.msrb.mxu3 %v1194_v43  ;;  %437 = vmatpush.msrb.mxu2 %v1234_v51 }
  0x4a   : > { %351 = vmatpush.msrb.mxu0 %v1455_v27  ;;  %415 = vmatpush.msrb.mxu1 %v1200_v44 }
  0x4b   : > { %352 = vmatmul.f32.vlgmr.msrb.gmra.mxu0 %v318_v13  ;;  %478 = vmatpush.msrb.mxu3 %v1218_v47  ;;  %v1694_v13 = vld [vmem:[#allocation23_spill] sm:$0xff] }
  0x4c   : > { %510 = vmatpush.msra.mxu0 %v957_v5  ;;  %416 = vmatpush.msrb.mxu1 %v1240_v52 }
  0x4d   : > { %438 = vmatpush.msrb.mxu2 %v1260_v55  ;;  %479 = vmatpush.msrb.mxu3 %v1247_v53 }
  0x4e   : > { %511 = vmatpush.msra.mxu0 %v979_v9  ;;  %417 = vmatpush.msrb.mxu1 %v1265_v56 }
  0x4f   : > { %439 = vmatpush.msrb.mxu2 %v1284_v59  ;;  %480 = vmatpush.msrb.mxu3 %v1272_v57 }
  0x50   : > { %512 = vmatpush.msra.mxu0 %v991_v11  ;;  %418 = vmatpush.msrb.mxu1 %v1289_v60 }
  0x51   : > { %440 = vmatpush.msrb.mxu2 %v1320_v54  ;;  %481 = vmatpush.msrb.mxu3 %v1296_v61 }
  0x52   : > { %513 = vmatpush.msra.mxu0 %v1015_v15  ;;  %553 = vmatpush.msra.mxu1 %v1302_v62  ;;  %v1695_v15 = vld [vmem:[#allocation11_spill] sm:$0xff] }
  0x53   : > { %355 = vmatmul.f32.gmra.mxu0 %v319_v39  ;;  %441 = vmatpush.msrb.mxu2 %v1339_v45  ;;  %v1696_v39 = vld [vmem:[#allocation12_spill] sm:$0xff] }
  0x54   : > { %514 = vmatpush.msra.mxu0 %v1045_v20  ;;  %554 = vmatpush.msra.mxu1 %v1326_v50 }
  0x55   : > { %482 = vmatpush.msrb.mxu3 %v1694_v13  ;;  %620 = vmatpush.msra.mxu2 %v929_v0  ;;  %v1698_v0 = vld [vmem:[#allocation15_spill] sm:$0xff] }
  0x56   : > { %515 = vmatpush.msra.mxu0 %v1069_v24  ;;  %555 = vmatpush.msra.mxu1 %v1344_v40  ;;  %v1697_v24 = vld [vmem:[#allocation13_spill] sm:$0xff] }
  0x57   : > { %643 = vmatpush.msra.mxu3 %v962_v6  ;;  %621 = vmatpush.msra.mxu2 %v934_v1  ;;  %v1699_v1 = vld [vmem:[#allocation16_spill] sm:$0xff] }
  0x58   : > { %516 = vmatpush.msra.mxu0 %v1695_v15  ;;  %556 = vmatpush.msra.mxu1 %v1353_v28  ;;  %v1701_v6 = vld [vmem:[#allocation20_spill] sm:$0xff] }
  0x59   : > { %644 = vmatpush.msra.mxu3 %v986_v10  ;;  %622 = vmatpush.msra.mxu2 %v940_v2  ;;  %v1700_v2 = vld [vmem:[#allocation19_spill] sm:$0xff]  ;;  %v1703_v10 = vld [vmem:[#allocation22_spill] sm:$0xff] }
  0x5a   : > { %517 = vmatpush.msra.mxu0 %v1696_v39  ;;  %557 = vmatpush.msra.mxu1 %v1361_v17 }
  0x5b   : > { %645 = vmatpush.msra.mxu3 %v1008_v14  ;;  %623 = vmatpush.msra.mxu2 %v967_v7  ;;  %v1702_v7 = vld [vmem:[#allocation21_spill] sm:$0xff]  ;;  %v1705_v14 = vld [vmem:[#allocation3_spill] sm:$0xff] }
  0x5c   : > { %518 = vmatpush.msra.mxu0 %v1697_v24  ;;  %558 = vmatpush.msra.mxu1 %v1368_v48 }
  0x5d   : > { %646 = vmatpush.msra.mxu3 %v1020_v16  ;;  %624 = vmatpush.msra.mxu2 %v996_v12  ;;  %v1704_v12 = vld [vmem:[#allocation24_spill] sm:$0xff] }
  0x5e   : > { %519 = vmatpush.msra.mxu0 %v1698_v0  ;;  %559 = vmatpush.msra.mxu1 %v1377_v32  ;;  %v1706_v16 = vld [vmem:[#allocation4_spill] sm:$0xff] }
  0x5f   : > { %647 = vmatpush.msra.mxu3 %v1050_v21  ;;  %625 = vmatpush.msra.mxu2 %v1025_v18  ;;  %v1707_v18 = vld [vmem:[#allocation5_spill] sm:$0xff]  ;;  %v1708_v21 = vld [vmem:[#allocation7_spill] sm:$0xff] }
  0x60   : > { %520 = vmatpush.msra.mxu0 %v1699_v1  ;;  %560 = vmatpush.msra.mxu1 %v1386_v58 }
  0x61   : > { %648 = vmatpush.msra.mxu3 %v1074_v25  ;;  %626 = vmatpush.msra.mxu2 %v1055_v22  ;;  %v1709_v22 = vld [vmem:[#allocation8_spill] sm:$0xff]  ;;  %v1710_v25 = vld [vmem:[#allocation10_spill] sm:$0xff] }
  0x62   : > { %521 = vmatpush.msra.mxu0 %v1700_v2  ;;  %561 = vmatpush.msra.mxu1 %v1394_v4 }
  0x63   : > { %649 = vmatpush.msra.mxu3 %v1104_v29  ;;  %627 = vmatpush.msra.mxu2 %v1079_v26  ;;  %v1711_v26 = vld [vmem:[#allocation14_spill] sm:$0xff] }
  0x64   : > { %522 = vmatpush.msra.mxu0 %v1701_v6  ;;  %562 = vmatpush.msra.mxu1 %v1401_v49 }
  0x65   : > { %650 = vmatpush.msra.mxu3 %v1128_v33  ;;  %628 = vmatpush.msra.mxu2 %v1109_v30 }
  0x66   : > { %523 = vmatpush.msra.mxu0 %v1702_v7  ;;  %563 = vmatpush.msra.mxu1 %v1410_v3 }
  0x67   : > { %651 = vmatpush.msra.mxu3 %v1153_v37  ;;  %629 = vmatpush.msra.mxu2 %v1133_v34 }
  0x68   : > { %524 = vmatpush.msra.mxu0 %v1703_v10  ;;  %564 = vmatpush.msra.mxu1 %v1419_v36 }
  0x69   : > { %652 = vmatpush.msra.mxu3 %v1177_v41  ;;  %630 = vmatpush.msra.mxu2 %v1158_v38 }
  0x6a   : > { %525 = vmatpush.msra.mxu0 %v1704_v12  ;;  %565 = vmatpush.msra.mxu1 %v1428_v63 }
  0x6b   : > { %653 = vmatpush.msra.mxu3 %v1211_v46  ;;  %631 = vmatpush.msra.mxu2 %v1187_v42 }
  0x6c   : > { %684 = vmatpush.msrb.mxu0 %v1705_v14  ;;  %566 = vmatpush.msra.mxu1 %v1437_v19 }
  0x6d   : > { %654 = vmatpush.msra.mxu3 %v1234_v51  ;;  %632 = vmatpush.msra.mxu2 %v1200_v44 }
  0x6e   : > { %685 = vmatpush.msrb.mxu0 %v1706_v16  ;;  %567 = vmatpush.msra.mxu1 %v1446_v23 }
  0x6f   : > { %655 = vmatpush.msra.mxu3 %v1260_v55  ;;  %633 = vmatpush.msra.mxu2 %v1240_v52  ;;  %v1712_v55 = vld [vmem:[#allocation17_spill] sm:$0xff] }
  0x70   : > { %686 = vmatpush.msrb.mxu0 %v974_v8  ;;  %568 = vmatpush.msra.mxu1 %v1455_v27 }
  0x71   : > { %656 = vmatpush.msra.mxu3 %v1284_v59  ;;  %634 = vmatpush.msra.mxu2 %v1265_v56 }
  0x72   : > { %687 = vmatpush.msrb.mxu0 %v1707_v18 }
  0x73   : > { %657 = vmatpush.msra.mxu3 %v1320_v54  ;;  %635 = vmatpush.msra.mxu2 %v1289_v60 }
  0x74   : > { %688 = vmatpush.msrb.mxu0 %v1708_v21 }
  0x75   : > { %658 = vmatpush.msra.mxu3 %v1339_v45 }
  0x76   : > { %689 = vmatpush.msrb.mxu0 %v1709_v22 }
  0x78   : > { %690 = vmatpush.msrb.mxu0 %v1710_v25 }
  0x7a   : > { %691 = vmatpush.msrb.mxu0 %v1116_v31 }
  0x7c   : > { %692 = vmatpush.msrb.mxu0 %v1140_v35 }
  0x7e   : > { %693 = vmatpush.msrb.mxu0 %v1711_v26 }
  0x80   : > { %694 = vmatpush.msrb.mxu0 %v1194_v43 }
  0x82   : > { %695 = vmatpush.msrb.mxu0 %v1218_v47 }
  0x84   : > { %696 = vmatpush.msrb.mxu0 %v1247_v53 }
  0x86   : > { %697 = vmatpush.msrb.mxu0 %v1272_v57 }
  0x88   : > { %698 = vmatpush.msrb.mxu0 %v1296_v61 }
  0x8a   : > { %699 = vmatpush.msrb.mxu0 %v1694_v13 }
  0xac   : > { %v203_v29 = vpop.f32.mrf.mxu0  ;;  %v226_v30 = vpop.f32.mrf.mxu1 }
  0xad   : > { %v227_v37 = vadd.f32 %v226_v30, %v203_v29  ;;  %v1713_v30 = vld [vmem:[#allocation18_spill] sm:$0xff] }
  0xaf   : > { %v267_v33 = vpop.f32.mrf.mxu2 }
  0xb0   : > { %v273_v41 = vadd.f32 %v267_v33, %v227_v37 }
  0xb1   : > { %v310_v38 = vpop.f32.mrf.mxu3 }
  0xb2   : > { %v316_v44 = vadd.f32 %v310_v38, %v273_v41 }
  0xb4   : > { %v206_v34 = vpop.f32.mrf.mxu0  ;;  %v229_v42 = vpop.f32.mrf.mxu1 }
  0xb5   : > { %v230_v45 = vadd.f32 %v229_v42, %v206_v34 }
  0xb7   : > { %v270_v46 = vpop.f32.mrf.mxu2 }
  0xb8   : > { %v274_v54 = vadd.f32 %v270_v46, %v230_v45 }
  0xb9   : > { %v313_v59 = vpop.f32.mrf.mxu3 }
  0xba   : > { %v317_v27 = vadd.f32 %v313_v59, %v274_v54 }
  0xc8   : > { %v353_v51 = vpop.f32.mrf.mxu0 }
  0xc9   : > { %v359_v52 = vadd.f32 %v353_v51, %v316_v44 }
  0xcb   : > { %v361_v56 = vadd.f32 %v359_v52, %v1712_v55 }
  0xcd   : > { %v363_v60 = vmax.f32 %v361_v56, 0.0 }
  0xcf   : > { %365 = vst [vmem:[#allocation2 + $0x8] sm:$0xff] %v363_v60  ;;  %483 = vmatmul.f32.vlgmr.msrb.gmra.mxu3 %v363_v60 }
  0xd0   : > { %v356_v23 = vpop.f32.mrf.mxu0  ;;  %869 = vmatpush.msrb.mxu3 %v1705_v14 }
  0xd1   : > { %v360_v29 = vadd.f32 %v356_v23, %v317_v27 }
  0xd2   : > { %870 = vmatpush.msrb.mxu3 %v1706_v16 }
  0xd3   : > { %v362_v33 = vadd.f32 %v360_v29, %v1713_v30 }
  0xd4   : > { %871 = vmatpush.msrb.mxu3 %v974_v8 }
  0xd5   : > { %v364_v34 = vmax.f32 %v362_v33, 0.0 }
  0xd6   : > { %v385_v37 = vld [vmem:[#allocation2 + $0x7] sm:$0xff]  ;;  %872 = vmatpush.msrb.mxu3 %v1707_v18 }
  0xd7   : > { %v367_v38 = vld [vmem:[#allocation2 + $0x6] sm:$0xff]  ;;  %366 = vst [vmem:[#allocation2 + $0x10] sm:$0xff] %v364_v34  ;;  %419 = vmatmul.f32.vlgmr.msrb.gmra.mxu1 %v385_v37  ;;  %486 = vmatmul.f32.gmra.mxu3 %v364_v34 }
  0xd8   : > { %442 = vmatmul.f32.vlgmr.msrb.gmra.mxu2 %v367_v38  ;;  %727 = vmatpush.msrb.mxu1 %v957_v5  ;;  %v1714_v5 = vld [vmem:[#allocation6_spill] sm:$0xff] }
  0xd9   : > { %770 = vmatpush.msrb.mxu2 %v1302_v62  ;;  %873 = vmatpush.msrb.mxu3 %v1708_v21 }
  0xda   : > { %728 = vmatpush.msrb.mxu1 %v979_v9  ;;  %v1715_v9 = vld [vmem:[#allocation9_spill] sm:$0xff] }
  0xdb   : > { %771 = vmatpush.msrb.mxu2 %v1326_v50  ;;  %874 = vmatpush.msrb.mxu3 %v1709_v22 }
  0xdc   : > { %729 = vmatpush.msrb.mxu1 %v991_v11 }
  0xdd   : > { %772 = vmatpush.msrb.mxu2 %v1344_v40  ;;  %875 = vmatpush.msrb.mxu3 %v1710_v25 }
  0xde   : > { %v386_v8 = vld [vmem:[#allocation2 + $0xf] sm:$0xff]  ;;  %730 = vmatpush.msrb.mxu1 %v1714_v5 }
  0xdf   : > { %v368_v23 = vld [vmem:[#allocation2 + $0xe] sm:$0xff]  ;;  %422 = vmatmul.f32.gmra.mxu1 %v386_v8  ;;  %773 = vmatpush.msrb.mxu2 %v1353_v28 }
  0xe0   : > { %v492_v27 = vld [vmem:[#allocation2 + $0x9] sm:$0xff]  ;;  %445 = vmatmul.f32.gmra.mxu2 %v368_v23  ;;  %731 = vmatpush.msrb.mxu1 %v1045_v20  ;;  %v493_v20 = vld [vmem:[#allocation2 + $0x11] sm:$0xff] }
  0xe1   : > { %526 = vmatmul.f32.vlgmr.msra.gmra.mxu0 %v492_v27  ;;  %876 = vmatpush.msrb.mxu3 %v1116_v31  ;;  %v535_v11 = vld [vmem:[#allocation2 + $0xa] sm:$0xff] }
  0xe2   : > { %732 = vmatpush.msrb.mxu1 %v1715_v9  ;;  %774 = vmatpush.msrb.mxu2 %v1361_v17 }
  0xe3   : > { %877 = vmatpush.msrb.mxu3 %v1140_v35 }
  0xe4   : > { %733 = vmatpush.msrb.mxu1 %v1695_v15  ;;  %775 = vmatpush.msrb.mxu2 %v1368_v48  ;;  %v536_v15 = vld [vmem:[#allocation2 + $0x12] sm:$0xff] }
  0xe5   : > { %878 = vmatpush.msrb.mxu3 %v1711_v26 }
  0xe6   : > { %734 = vmatpush.msrb.mxu1 %v1696_v39  ;;  %776 = vmatpush.msrb.mxu2 %v1377_v32 }
  0xe7   : > { %569 = vmatmul.f32.vlgmr.msra.gmra.mxu1 %v535_v11  ;;  %879 = vmatpush.msrb.mxu3 %v1194_v43 }
  0xe8   : > { %735 = vmatpush.msrb.mxu1 %v1697_v24  ;;  %777 = vmatpush.msrb.mxu2 %v1386_v58  ;;  %v1717_v24 = vld [vmem:[#allocation26_spill] sm:$0xff] }
  0xe9   : > { %529 = vmatmul.f32.gmra.mxu0 %v493_v20  ;;  %880 = vmatpush.msrb.mxu3 %v1218_v47 }
  0xea   : > { %736 = vmatpush.msrb.mxu1 %v1698_v0  ;;  %778 = vmatpush.msrb.mxu2 %v1394_v4  ;;  %v1716_v4 = vld [vmem:[#allocation25_spill] sm:$0xff] }
  0xeb   : > { %881 = vmatpush.msrb.mxu3 %v1247_v53 }
  0xec   : > { %737 = vmatpush.msrb.mxu1 %v1699_v1  ;;  %779 = vmatpush.msrb.mxu2 %v1401_v49 }
  0xed   : > { %882 = vmatpush.msrb.mxu3 %v1272_v57 }
  0xee   : > { %738 = vmatpush.msrb.mxu1 %v1700_v2  ;;  %780 = vmatpush.msrb.mxu2 %v1410_v3 }
  0xef   : > { %572 = vmatmul.f32.gmra.mxu1 %v536_v15  ;;  %883 = vmatpush.msrb.mxu3 %v1296_v61 }
  0xf0   : > { %739 = vmatpush.msrb.mxu1 %v1701_v6  ;;  %781 = vmatpush.msrb.mxu2 %v1419_v36 }
  0xf1   : > { %884 = vmatpush.msrb.mxu3 %v1694_v13 }
  0xf2   : > { %740 = vmatpush.msrb.mxu1 %v1702_v7  ;;  %782 = vmatpush.msrb.mxu2 %v1428_v63 }
  0xf4   : > { %741 = vmatpush.msrb.mxu1 %v1703_v10  ;;  %783 = vmatpush.msrb.mxu2 %v1437_v19 }
  0xf6   : > { %742 = vmatpush.msrb.mxu1 %v1704_v12  ;;  %784 = vmatpush.msrb.mxu2 %v1716_v4 }
  0xf8   : > { %785 = vmatpush.msrb.mxu2 %v1717_v24 }
 0x152   : > { %v484_v40 = vpop.f32.mrf.mxu3 }
 0x154   : > { %v420_v28 = vpop.f32.mrf.mxu1 }
 0x15a   : > { %v487_v61 = vpop.f32.mrf.mxu3 }
 0x15b   : > { %v443_v31 = vpop.f32.mrf.mxu2 }
 0x15c   : > { %v444_v35 = vadd.f32 %v443_v31, %v420_v28  ;;  %v423_v43 = vpop.f32.mrf.mxu1 }
 0x15e   : > { %v490_v47 = vadd.f32 %v484_v40, %v444_v35  ;;  %v527_v48 = vpop.f32.mrf.mxu0 }
 0x160   : > { %v533_v50 = vadd.f32 %v527_v48, %v490_v47 }
 0x163   : > { %v446_v49 = vpop.f32.mrf.mxu2 }
 0x164   : > { %v447_v53 = vadd.f32 %v446_v49, %v423_v43  ;;  %v570_v57 = vpop.f32.mrf.mxu1 }
 0x165   : > { %v576_v58 = vadd.f32 %v570_v57, %v533_v50 }
 0x166   : > { %v491_v19 = vadd.f32 %v487_v61, %v447_v53  ;;  %v530_v32 = vpop.f32.mrf.mxu0 }
 0x167   : > { %v578_v62 = vadd.f32 %v576_v58, %v1712_v55 }
 0x168   : > { %v534_v3 = vadd.f32 %v530_v32, %v491_v19 }
 0x169   : > { %v580_v17 = vmax.f32 %v578_v62, 0.0 }
 0x16b   : > { %582 = vst [vmem:[#allocation2 + $0x8] sm:$0xff] %v580_v17  ;;  %700 = vmatmul.f32.vlgmr.msrb.gmra.mxu0 %v580_v17 }
 0x16c   : > { %v573_v36 = vpop.f32.mrf.mxu1 }
 0x16d   : > { %v577_v63 = vadd.f32 %v573_v36, %v534_v3 }
 0x16f   : > { %v579_v13 = vadd.f32 %v577_v63, %v1713_v30 }
 0x171   : > { %v581_v39 = vmax.f32 %v579_v13, 0.0 }
 0x172   : > { %v602_v0 = vld [vmem:[#allocation2 + $0x7] sm:$0xff] }
 0x173   : > { %v584_v1 = vld [vmem:[#allocation2 + $0x6] sm:$0xff]  ;;  %583 = vst [vmem:[#allocation2 + $0x10] sm:$0xff] %v581_v39  ;;  %636 = vmatmul.f32.vlgmr.msra.gmra.mxu2 %v602_v0 }
 0x174   : > { %659 = vmatmul.f32.vlgmr.msra.gmra.mxu3 %v584_v1 }
 0x17a   : > { %v603_v2 = vld [vmem:[#allocation2 + $0xf] sm:$0xff] }
 0x17b   : > { %v585_v6 = vld [vmem:[#allocation2 + $0xe] sm:$0xff]  ;;  %639 = vmatmul.f32.gmra.mxu2 %v603_v2 }
 0x17c   : > { %v709_v7 = vld [vmem:[#allocation2 + $0x9] sm:$0xff]  ;;  %662 = vmatmul.f32.gmra.mxu3 %v585_v6  ;;  %v710_v12 = vld [vmem:[#allocation2 + $0x11] sm:$0xff] }
 0x17d   : > { %743 = vmatmul.f32.vlgmr.msrb.gmra.mxu1 %v709_v7  ;;  %v752_v10 = vld [vmem:[#allocation2 + $0xa] sm:$0xff]  ;;  %v753_v14 = vld [vmem:[#allocation2 + $0x12] sm:$0xff] }
 0x183   : > { %786 = vmatmul.f32.vlgmr.msrb.gmra.mxu2 %v752_v10 }
 0x184   : > { %703 = vmatmul.f32.vlgmr.msrb.gmra.mxu3 %v581_v39 }
 0x185   : > { %746 = vmatmul.f32.gmra.mxu1 %v710_v12 }
 0x18b   : > { %789 = vmatmul.f32.gmra.mxu2 %v753_v14 }
 0x1e8   : > { %v701_v26 = vpop.f32.mrf.mxu0 }
 0x1f6   : > { %v637_v16 = vpop.f32.mrf.mxu2 }
 0x1f7   : > { %v660_v18 = vpop.f32.mrf.mxu3 }
 0x1f8   : > { %v661_v21 = vadd.f32 %v660_v18, %v637_v16 }
 0x1fa   : > { %v707_v41 = vadd.f32 %v701_v26, %v661_v21  ;;  %v744_v42 = vpop.f32.mrf.mxu1 }
 0x1fc   : > { %v750_v44 = vadd.f32 %v744_v42, %v707_v41 }
 0x1fe   : > { %v640_v22 = vpop.f32.mrf.mxu2 }
 0x1ff   : > { %v663_v25 = vpop.f32.mrf.mxu3 }
 0x200   : > { %v664_v51 = vadd.f32 %v663_v25, %v640_v22 }
 0x202   : > { %v747_v60 = vpop.f32.mrf.mxu1 }
 0x206   : > { %v787_v46 = vpop.f32.mrf.mxu2 }
 0x207   : > { %v704_v45 = vpop.f32.mrf.mxu3  ;;  %v793_v52 = vadd.f32 %v787_v46, %v750_v44 }
 0x208   : > { %v708_v54 = vadd.f32 %v704_v45, %v664_v51 }
 0x209   : > { %v795_v56 = vadd.f32 %v793_v52, %v1712_v55 }
 0x20a   : > { %v751_v29 = vadd.f32 %v747_v60, %v708_v54 }
 0x20b   : > { %v797_v59 = vmax.f32 %v795_v56, 0.0 }
 0x20d   : > { %799 = vst [vmem:[%s143_s25] sm:$0xff] %v797_v59 }
 0x20e   : > { %v790_v33 = vpop.f32.mrf.mxu2 }
 0x20f   : > { %v794_v34 = vadd.f32 %v790_v33, %v751_v29 }
 0x211   : > { %v796_v37 = vadd.f32 %v794_v34, %v1713_v30 }
 0x213   : > { %v798_v38 = vmax.f32 %v796_v37, 0.0 }
 0x215   : > { %800 = vst [vmem:[%s143_s25 + $0x8] sm:$0xff] %v798_v38 }
 0x216 PF: > { %s12_s9 = sadd.s32 1, %s900_s9  }
 0x217   : > { %p9_p4 = scmp.ge.s32.totalorder %s12_s9, 4  }
 0x219   :  { %11 = sbr.rel (!%p9_p4) target bundleno = 1 (0x1), region = 58 }

</bundles_post_ra>
